<compile_context>
chip_gen: v5e
topology: v5e:2x2
jax: 0.10.0
libtpu: 0.0.40
codegen_flags: <defaults>
</compile_context>

<pallas_src>
import functools

import jax
import jax.numpy as jnp
from jax.experimental import pallas as pl
from jax.experimental.pallas import tpu as pltpu

NUM_CLASS = 22       # BatchGNN.NUM_CLASS
LANE = 128           # TPU lane width / MXU tile edge


def _round_up(x, m):
    return (x + m - 1) // m * m


def _tpu_defaults():
    """(row_tile, vmem_limit_bytes) picked per TPU generation, with safe fallbacks."""
    tb = 128
    vmem_limit = 64 * 1024 * 1024
    try:
        info = pltpu.get_tpu_info()
        cap = int(getattr(info, "vmem_capacity_bytes", 128 * 1024 * 1024))
        # Leave headroom for compiler-internal scratch; never request all of physical VMEM
        # (v7x: 64 MiB/TC -> ~48 MiB; v5e/v6e: 128 MiB -> 96 MiB).
        vmem_limit = min(cap * 3 // 4, 96 * 1024 * 1024)
        name = str(getattr(info, "chip_version", "")).lower()
        if ("v6" in name) or ("v7" in name) or ("trillium" in name):
            tb = 256          # 256-deep MXU on v6e/v7x; v5e's is 128-deep -> keep 128
    except Exception:          # conservative fallback (older jax / query unavailable)
        pass
    return tb, vmem_limit


# ----------------------------- Pallas kernel ---------------------------------
def _gnn_layer_kernel(a_ref, xk_ref, xs_ref, dinv_ref, wa_ref, ws_ref, b_ref,
                      out_ref, acc_ref, *, apply_relu):
    # a_ref   : (tb, tk)  int8  in-edge indicator tile (edge count for multi-edges)
    # xk_ref  : (tk, Fp)  bf16  streamed x chunk along the Np contraction axis
    # xs_ref  : (tb, Fp)  bf16  self rows of this output tile (own BlockSpec -> pipelined)
    # dinv_ref: (tb, 1)   f32   1 / max(in-degree, 1)  (mean scale kept out of A, f32)
    # wa_ref  : (Fp, Hp)  bf16  Linear rows acting on the aggregated half
    # ws_ref  : (Fp, Hp)  bf16  Linear rows acting on the self half
    # b_ref   : (1,  Hp)  f32
    # out_ref : (tb, Hp)
    # acc_ref : (tb, Fp)  f32   A @ x accumulator across the Np (k) grid axis
    k = pl.program_id(1)

    @pl.when(k == 0)
    def _():
        acc_ref[...] = jnp.zeros_like(acc_ref)

    # 8-bit A halves the HBM stream of the bandwidth-bound operand; upcast on the VPU,
    # accumulate on the MXU in f32.
    acc_ref[...] += jnp.dot(a_ref[...].astype(jnp.bfloat16), xk_ref[...],
                            preferred_element_type=jnp.float32)

    @pl.when(k == pl.num_programs(1) - 1)
    def _():
        # mean over in-neighbours: apply 1/deg in f32 after the full contraction
        aggr = acc_ref[...] * dinv_ref[...]
        # cat([aggr, self]) @ W == dot(aggr, W_aggr) + dot(self, W_self): two MXU matmuls
        # summed in f32 (no (tb, 2Fp) staging round trip through VMEM).
        h = jnp.dot(aggr.astype(jnp.bfloat16), wa_ref[...],
                    preferred_element_type=jnp.float32)
        h = h + jnp.dot(xs_ref[...], ws_ref[...], preferred_element_type=jnp.float32)
        h = h + b_ref[...]
        if apply_relu:                      # nn.ReLU on all but the last layer (Identity)
            h = jnp.maximum(h, 0.0)
        # TODO(synk): nn.Dropout(0.1) is identity at inference; not emulated here.
        # h / (torch.norm(h, 2, -1, keepdim=True) + 1e-8); divide moved to the EUP slot.
        l2 = jnp.sqrt(jnp.sum(h * h, axis=-1, keepdims=True)) + 1e-8
        out_ref[...] = (h * pl.reciprocal(l2, approx=True)).astype(out_ref.dtype)


def gnn_layer(a, x, dinv, w_aggr, w_self, b, *, apply_relu, out_dtype,
              tb, tk, vmem_limit_bytes):
    """Fused: mean-aggregate (A@x, K-split) + concat-with-self Linear(+ReLU) + L2-normalise."""
    np_, fp = x.shape
    hp = w_aggr.shape[1]
    assert a.shape == (np_, np_) and w_aggr.shape == (fp, hp) and w_self.shape == (fp, hp)
    assert np_ % tb == 0 and np_ % tk == 0

    kern = functools.partial(_gnn_layer_kernel, apply_relu=apply_relu)
    return pl.pallas_call(
        kern,
        out_shape=jax.ShapeDtypeStruct((np_, hp), out_dtype),
        grid_spec=pltpu.PrefetchScalarGridSpec(
            num_scalar_prefetch=0,
            grid=(np_ // tb, np_ // tk),          # (row tiles, Np contraction tiles)
            in_specs=[
                pl.BlockSpec((tb, tk), lambda i, k: (i, k)),    # A tile (streamed, int8)
                pl.BlockSpec((tk, fp), lambda i, k: (k, 0)),    # x contraction chunk
                pl.BlockSpec((tb, fp), lambda i, k: (i, 0)),    # x self rows
                pl.BlockSpec((tb, 1), lambda i, k: (i, 0)),     # 1/deg
                pl.BlockSpec((fp, hp), lambda i, k: (0, 0)),    # W (aggr half)
                pl.BlockSpec((fp, hp), lambda i, k: (0, 0)),    # W (self half)
                pl.BlockSpec((1, hp), lambda i, k: (0, 0)),     # bias
            ],
            out_specs=pl.BlockSpec((tb, hp), lambda i, k: (i, 0)),
            scratch_shapes=[pltpu.VMEM((tb, fp), jnp.float32)],
        ),
        compiler_params=pltpu.CompilerParams(
            dimension_semantics=("parallel", "arbitrary"),      # rows across TCs; reduce last
            vmem_limit_bytes=vmem_limit_bytes,
        ),
    )(a, x, x, dinv, w_aggr, w_self, b)


# ----------------------------- Model wrapper ----------------------------------
class ExplainableGNNPallas:
    """JAX/Pallas re-implementation of ExplainableGNN.forward (inference, aggr='mean')."""

    NUM_CLASS = NUM_CLASS

    def __init__(self, encoding_dim, hidden, out_dim, layers, key):
        # net = [Linear(2*(encoding_dim+22) -> hidden) + ReLU]
        #     + [Linear(2*hidden -> hidden) + ReLU] * (layers - 2)
        #     + [Linear(2*hidden -> out_dim) + Identity]
        self.layers = layers
        self.out_dim = out_dim
        self.tb, self.vmem_limit = _tpu_defaults()
        self.tk = 128
        dims_in = [encoding_dim + self.NUM_CLASS] + [hidden] * (layers - 1)
        dims_out = [hidden] * (layers - 1) + [out_dim]
        self.params = []
        for f_in, f_out in zip(dims_in, dims_out):
            key, wk, bk = jax.random.split(key, 3)
            bound = (2.0 * f_in) ** -0.5                      # nn.Linear default init
            w = jax.random.uniform(wk, (2 * f_in, f_out), jnp.float32, -bound, bound)
            b = jax.random.uniform(bk, (1, f_out), jnp.float32, -bound, bound)
            fp, hp = _round_up(f_in, LANE), _round_up(f_out, LANE)
            # lane-pad and split the weight into its aggr-half / self-half rows
            wa = jnp.zeros((fp, hp), jnp.float32).at[:f_in, :f_out].set(w[:f_in])
            ws = jnp.zeros((fp, hp), jnp.float32).at[:f_in, :f_out].set(w[f_in:])
            bp = jnp.zeros((1, hp), jnp.float32).at[:, :f_out].set(b)
            self.params.append((wa.astype(jnp.bfloat16), ws.astype(jnp.bfloat16), bp))

    @staticmethod
    def _adjacency(edge_index, num_padded):
        # MessagePassing(aggr='mean', flow='source_to_target'):
        #   aggr[i] = mean_{(j -> i) in E} x[j]   (0 for nodes with no incoming edges)
        src, dst = edge_index[0], edge_index[1]
        # in-edge indicator built directly in int8 (no Np^2 f32 intermediate in HBM)
        a = jnp.zeros((num_padded, num_padded), jnp.int8).at[dst, src].add(1)
        # degrees built O(E) from the edge list; 1/deg applied in f32 inside the kernel
        deg = jnp.zeros((num_padded,), jnp.float32).at[dst].add(1.0)
        dinv = (1.0 / jnp.maximum(deg, 1.0)).reshape(num_padded, 1)
        return a, dinv

    def __call__(self, x, edge_index):
        n, f0 = x.shape
        pad = max(self.tb, self.tk)               # power-of-two tiles -> lcm == max
        np_ = _round_up(n, pad)
        fp0 = _round_up(f0, LANE)
        a, dinv = self._adjacency(edge_index, np_)
        h = jnp.zeros((np_, fp0), jnp.bfloat16).at[:n, :f0].set(x.astype(jnp.bfloat16))
        for layer, (wa, ws, b) in enumerate(self.params):
            last = layer == self.layers - 1
            h = gnn_layer(a, h, dinv, wa, ws, b,
                          apply_relu=not last,
                          out_dtype=jnp.float32 if last else jnp.bfloat16,
                          tb=self.tb, tk=self.tk,
                          vmem_limit_bytes=self.vmem_limit)
        # final_sm=False in ExplainableGNN -> no softmax
        return h[:n, :self.out_dim]


# --------------------------------- Demo ---------------------------------------
if __name__ == "__main__":
    key = jax.random.PRNGKey(0)
    encoding_dim, hidden, out_dim, layers = 10, 32, 16, 3     # ExplainableGNN default layers=3
    num_nodes, num_edges = 64, 256

    key, kx, ks, kd, kp = jax.random.split(key, 5)
    # ExplainableGNN assumes x already carries encoded features + label one-hot info,
    # so feature dim = encoding_dim + NUM_CLASS (net[0] fan-in is 2 * that).
    feat_dim = encoding_dim + NUM_CLASS
    x = jax.random.normal(kx, (num_nodes, feat_dim), jnp.float32)
    src = jax.random.randint(ks, (num_edges,), 0, num_nodes)
    dst = jax.random.randint(kd, (num_edges,), 0, num_nodes)
    edge_index = jnp.stack([src, dst], axis=0)                # (2, E)

    model = ExplainableGNNPallas(encoding_dim, hidden, out_dim, layers, kp)
    out = model(x, edge_index)
    out = jax.block_until_ready(out)

    assert out.shape == (num_nodes, out_dim)
    assert bool(jnp.all(jnp.isfinite(out)))
    # rows are L2-normalised by construction (approx-reciprocal + bf16 matmuls -> loose tol)
    norms = jnp.linalg.norm(out, axis=-1)
    assert bool(jnp.all(jnp.abs(norms - 1.0) < 1e-2))
    print("KERNEL_OK")
</pallas_src>

<mosaic_0001>
module attributes {stable_mosaic.version = 11 : i64} {
  func.func @_gnn_layer_kernel(%arg0: i32, %arg1: i32, %arg2: memref<128x128xi8, #tpu.memory_space<vmem>>, %arg3: memref<128x128xbf16, #tpu.memory_space<vmem>>, %arg4: memref<128x128xbf16, #tpu.memory_space<vmem>>, %arg5: memref<128x1xf32, #tpu.memory_space<vmem>>, %arg6: memref<128x128xbf16, #tpu.memory_space<vmem>>, %arg7: memref<128x128xbf16, #tpu.memory_space<vmem>>, %arg8: memref<1x128xf32, #tpu.memory_space<vmem>>, %arg9: memref<128x128xbf16, #tpu.memory_space<vmem>>, %arg10: memref<128x128xf32, #tpu.memory_space<vmem>>) attributes {dimension_semantics = [#tpu.dimension_semantics<parallel>, #tpu.dimension_semantics<arbitrary>], iteration_bounds = array<i64: 1, 1>, scalar_prefetch = 0 : i64, scratch_operands = 1 : i64, tpu.core_type = #tpu.core_type<tc>, window_params = [{transform_indices = @transform_0, window_bounds = array<i64: 128, 128>}, {transform_indices = @transform_1, window_bounds = array<i64: 128, 128>}, {transform_indices = @transform_2, window_bounds = array<i64: 128, 128>}, {transform_indices = @transform_3, window_bounds = array<i64: 128, 1>}, {pipeline_mode = #tpu.pipeline_mode<synchronous>, transform_indices = @transform_4, window_bounds = array<i64: 128, 128>}, {pipeline_mode = #tpu.pipeline_mode<synchronous>, transform_indices = @transform_5, window_bounds = array<i64: 128, 128>}, {pipeline_mode = #tpu.pipeline_mode<synchronous>, transform_indices = @transform_6, window_bounds = array<i64: 1, 128>}, {transform_indices = @transform_7, window_bounds = array<i64: 128, 128>}]} {
    %c0_i32 = arith.constant 0 : i32
    %0 = arith.cmpi eq, %arg1, %c0_i32 : i32
    %1 = arith.extui %0 : i1 to i32
    %c0_i32_0 = arith.constant 0 : i32
    %2 = arith.cmpi ne, %1, %c0_i32_0 : i32
    scf.if %2 {
      %cst_10 = arith.constant 0.000000e+00 : f32
      %13 = vector.broadcast %cst_10 : f32 to vector<128x128xf32>
      %c0_11 = arith.constant 0 : index
      %c0_12 = arith.constant 0 : index
      %14 = vector.load %arg10[%c0_11, %c0_12] : memref<128x128xf32, #tpu.memory_space<vmem>>, vector<128x128xf32>
      tpu.vector_store %arg10[%c0_11, %c0_12], %13 {strides = array<i32>} : memref<128x128xf32, #tpu.memory_space<vmem>>, vector<128x128xf32>,
    } else {
    }
    %c0 = arith.constant 0 : index
    %c0_1 = arith.constant 0 : index
    %3 = vector.load %arg10[%c0, %c0_1] : memref<128x128xf32, #tpu.memory_space<vmem>>, vector<128x128xf32>
    %c0_2 = arith.constant 0 : index
    %c0_3 = arith.constant 0 : index
    %4 = vector.load %arg2[%c0_2, %c0_3] : memref<128x128xi8, #tpu.memory_space<vmem>>, vector<128x128xi8>
    %5 = arith.sitofp %4 : vector<128x128xi8> to vector<128x128xbf16>
    %c0_4 = arith.constant 0 : index
    %c0_5 = arith.constant 0 : index
    %6 = vector.load %arg3[%c0_4, %c0_5] : memref<128x128xbf16, #tpu.memory_space<vmem>>, vector<128x128xbf16>
    %cst = arith.constant dense<0.000000e+00> : vector<128x128xf32>
    %7 = tpu.matmul %5, %6, %cst {dimension_numbers = #tpu.dot_dimension_numbers<[1], [0], [0], [1], [0, 0, 1, 1], [], []>} : vector<128x128xbf16>, vector<128x128xbf16>, vector<128x128xf32> -> vector<128x128xf32>
    %8 = arith.addf %3, %7 : vector<128x128xf32>
    %c0_6 = arith.constant 0 : index
    %c0_7 = arith.constant 0 : index
    %9 = vector.load %arg10[%c0_6, %c0_7] : memref<128x128xf32, #tpu.memory_space<vmem>>, vector<128x128xf32>
    tpu.vector_store %arg10[%c0_6, %c0_7], %8 {strides = array<i32>} : memref<128x128xf32, #tpu.memory_space<vmem>>, vector<128x128xf32>,
    %c0_i32_8 = arith.constant 0 : i32
    %10 = arith.cmpi eq, %arg1, %c0_i32_8 : i32
    %11 = arith.extui %10 : i1 to i32
    %c0_i32_9 = arith.constant 0 : i32
    %12 = arith.cmpi ne, %11, %c0_i32_9 : i32
    scf.if %12 {
      %c0_10 = arith.constant 0 : index
      %c0_11 = arith.constant 0 : index
      %13 = vector.load %arg10[%c0_10, %c0_11] : memref<128x128xf32, #tpu.memory_space<vmem>>, vector<128x128xf32>
      %c0_12 = arith.constant 0 : index
      %c0_13 = arith.constant 0 : index
      %14 = vector.load %arg5[%c0_12, %c0_13] : memref<128x1xf32, #tpu.memory_space<vmem>>, vector<128x1xf32>
      %15 = vector.broadcast %14 : vector<128x1xf32> to vector<128x128xf32>
      %16 = arith.mulf %13, %15 : vector<128x128xf32>
      %17 = arith.truncf %16 : vector<128x128xf32> to vector<128x128xbf16>
      %c0_14 = arith.constant 0 : index
      %c0_15 = arith.constant 0 : index
      %18 = vector.load %arg6[%c0_14, %c0_15] : memref<128x128xbf16, #tpu.memory_space<vmem>>, vector<128x128xbf16>
      %cst_16 = arith.constant dense<0.000000e+00> : vector<128x128xf32>
      %19 = tpu.matmul %17, %18, %cst_16 {dimension_numbers = #tpu.dot_dimension_numbers<[1], [0], [0], [1], [0, 0, 1, 1], [], []>} : vector<128x128xbf16>, vector<128x128xbf16>, vector<128x128xf32> -> vector<128x128xf32>
      %c0_17 = arith.constant 0 : index
      %c0_18 = arith.constant 0 : index
      %20 = vector.load %arg4[%c0_17, %c0_18] : memref<128x128xbf16, #tpu.memory_space<vmem>>, vector<128x128xbf16>
      %c0_19 = arith.constant 0 : index
      %c0_20 = arith.constant 0 : index
      %21 = vector.load %arg7[%c0_19, %c0_20] : memref<128x128xbf16, #tpu.memory_space<vmem>>, vector<128x128xbf16>
      %cst_21 = arith.constant dense<0.000000e+00> : vector<128x128xf32>
      %22 = tpu.matmul %20, %21, %cst_21 {dimension_numbers = #tpu.dot_dimension_numbers<[1], [0], [0], [1], [0, 0, 1, 1], [], []>} : vector<128x128xbf16>, vector<128x128xbf16>, vector<128x128xf32> -> vector<128x128xf32>
      %23 = arith.addf %19, %22 : vector<128x128xf32>
      %c0_22 = arith.constant 0 : index
      %c0_23 = arith.constant 0 : index
      %24 = vector.load %arg8[%c0_22, %c0_23] : memref<1x128xf32, #tpu.memory_space<vmem>>, vector<1x128xf32>
      %25 = vector.broadcast %24 : vector<1x128xf32> to vector<128x128xf32>
      %26 = arith.addf %23, %25 : vector<128x128xf32>
      %cst_24 = arith.constant 0.000000e+00 : f32
      %27 = vector.broadcast %cst_24 : f32 to vector<128x128xf32>
      %28 = arith.maximumf %26, %27 : vector<128x128xf32>
      %29 = arith.mulf %28, %28 : vector<128x128xf32>
      %cst_25 = arith.constant dense<0.000000e+00> : vector<128xf32>
      %30 = vector.multi_reduction <add>, %29, %cst_25 [1] : vector<128x128xf32> to vector<128xf32>
      %31 = vector.shape_cast %30 : vector<128xf32> to vector<128x1xf32>
      %32 = math.sqrt %31 : vector<128x1xf32>
      %cst_26 = arith.constant 9.99999993E-9 : f32
      %33 = vector.broadcast %cst_26 : f32 to vector<128x1xf32>
      %34 = arith.addf %32, %33 : vector<128x1xf32>
      %35 = tpu.reciprocal %34 {approx = true} : vector<128x1xf32> -> vector<128x1xf32>
      %36 = vector.broadcast %35 : vector<128x1xf32> to vector<128x128xf32>
      %37 = arith.mulf %28, %36 : vector<128x128xf32>
      %38 = arith.truncf %37 : vector<128x128xf32> to vector<128x128xbf16>
      %c0_27 = arith.constant 0 : index
      %c0_28 = arith.constant 0 : index
      %39 = vector.load %arg9[%c0_27, %c0_28] : memref<128x128xbf16, #tpu.memory_space<vmem>>, vector<128x128xbf16>
      tpu.vector_store %arg9[%c0_27, %c0_28], %38 {strides = array<i32>} : memref<128x128xbf16, #tpu.memory_space<vmem>>, vector<128x128xbf16>,
    } else {
    }
    return
  }
  func.func @transform_0(%arg0: i32, %arg1: i32) -> (i32, i32) {
    %c0_i32 = arith.constant 0 : i32
    return %arg0, %arg1 : i32, i32
  }
  func.func @transform_1(%arg0: i32, %arg1: i32) -> (i32, i32) {
    %c0_i32 = arith.constant 0 : i32
    %c0_i32_0 = arith.constant 0 : i32
    return %arg1, %c0_i32 : i32, i32
  }
  func.func @transform_2(%arg0: i32, %arg1: i32) -> (i32, i32) {
    %c0_i32 = arith.constant 0 : i32
    %c0_i32_0 = arith.constant 0 : i32
    return %arg0, %c0_i32 : i32, i32
  }
  func.func @transform_3(%arg0: i32, %arg1: i32) -> (i32, i32) {
    %c0_i32 = arith.constant 0 : i32
    %c0_i32_0 = arith.constant 0 : i32
    return %arg0, %c0_i32 : i32, i32
  }
  func.func @transform_4(%arg0: i32, %arg1: i32) -> (i32, i32) {
    %c0_i32 = arith.constant 0 : i32
    %c0_i32_0 = arith.constant 0 : i32
    %c0_i32_1 = arith.constant 0 : i32
    return %c0_i32, %c0_i32_0 : i32, i32
  }
  func.func @transform_5(%arg0: i32, %arg1: i32) -> (i32, i32) {
    %c0_i32 = arith.constant 0 : i32
    %c0_i32_0 = arith.constant 0 : i32
    %c0_i32_1 = arith.constant 0 : i32
    return %c0_i32, %c0_i32_0 : i32, i32
  }
  func.func @transform_6(%arg0: i32, %arg1: i32) -> (i32, i32) {
    %c0_i32 = arith.constant 0 : i32
    %c0_i32_0 = arith.constant 0 : i32
    %c0_i32_1 = arith.constant 0 : i32
    return %c0_i32, %c0_i32_0 : i32, i32
  }
  func.func @transform_7(%arg0: i32, %arg1: i32) -> (i32, i32) {
    %c0_i32 = arith.constant 0 : i32
    %c0_i32_0 = arith.constant 0 : i32
    return %arg0, %c0_i32 : i32, i32
  }
}

</mosaic_0001>

<bundles_post_ra>
// kernel: tpu_custom_call.1
= control target key start
LH: loop header
LB: loop body
LE: loop exit
PB: predicated region body
PF: predicated region fallthrough
CT: control target
= control target key end

     0   :  { %12 = vsyncpa [#allocation4], 0  ;;  %s1855_s0 = inlined_call_operand.hbm [shape: s8[128,128], index: 0, kind: input, shape index: {}]   ;;  %s1856_s1 = inlined_call_operand.vmem [shape: bf16[128,128], index: 1, kind: input, shape index: {}]   ;;  %s1857_s2 = inlined_call_operand.vmem [shape: bf16[128,128], index: 2, kind: input, shape index: {}]   ;;  %s1858_s3 = inlined_call_operand.vmem [shape: f32[128,1], index: 3, kind: input, shape index: {}]   ;;  %s1859_s4 = inlined_call_operand.hbm [shape: bf16[128,128], index: 4, kind: input, shape index: {}]   ;;  %s1860_s5 = inlined_call_operand.hbm [shape: bf16[128,128], index: 5, kind: input, shape index: {}]   ;;  %s1861_s6 = inlined_call_operand.vmem [shape: f32[1,128], index: 6, kind: input, shape index: {}]   ;;  %s1862_s7 = inlined_call_operand.hbm [shape: bf16[128,128], index: 7, kind: output, shape index: {}]  }
   0x1   :  { %13 = vsyncpa [#allocation7], 0  ;;  %s38_s26 = sshll.u32 %s1859_s4, 4  ;;  %s39_s26 = int_to_ptr.hbm [resolvable:$true] %s38_s26 }
   0x2   :  { %14 = vsyncpa [#allocation5], 0  ;;  %s1514_s27 = smov [#allocation6]   ;;  %s19_s8 = sshll.u32 %s1855_s0, 4  ;;  %s20_s8 = int_to_ptr.hbm [resolvable:$true] %s19_s8 }
   0x3   :  { %s40_s28 = sshll.u32 %s1514_s27, 4  ;;  %s1515_s9 = smov 64   ;;  %s41_s28 = int_to_ptr.vmem [resolvable:$true] %s40_s28 }
   0x4   :  { %s1516_s10 = smov 4   ;;  %s1517_s11 = smov [#allocation3]  }
   0x5   :  { %46 = dma.hbm_to_vmem [thread:$0]  %s39_s26, 1024, %s41_s28, [#allocation7], %s1515_s9, %s1515_s9, %s1516_s10  }
   0x6   :  { %s21_s12 = sshll.u32 %s1517_s11, 4  ;;  %s1518_s4 = smov 128   ;;  %s22_s12 = int_to_ptr.vmem [resolvable:$true] %s21_s12 }
   0x7   :  { %s1519_s13 = smov 8   ;;  %s51_s16 = sshll.u32 %s1860_s5, 4  ;;  %s52_s16 = int_to_ptr.hbm [resolvable:$true] %s51_s16 }
   0x8   :  { %27 = dma.hbm_to_vmem [thread:$0]  %s20_s8, 512, %s22_s12, [#allocation4], %s1518_s4, %s1518_s4, %s1519_s13  }
   0x9   :  { %s1520_s17 = smov [#allocation8]  }
   0xa   :  { %s53_s0 = sshll.u32 %s1520_s17, 4  ;;  %s54_s0 = int_to_ptr.vmem [resolvable:$true] %s53_s0 }
   0xb   :  { %59 = dma.hbm_to_vmem [thread:$0]  %s52_s16, 1024, %s54_s0, [#allocation7], %s1515_s9, %s1515_s9, %s1516_s10  }
   0xc   :  { %1508 = dma.done.wait [#allocation4], 512  }
   0xd   :  { %1509 = vsyncadd [#allocation4], 4294966784 }
   0xe   :  { %1510 = dma.done.wait [#allocation7], 2048  }
   0xf   :  { %1511 = vsyncadd [#allocation7], 4294965248  ;;  %v1521_v0 = vmov 0   ;;  %v1239_v1 = vld [vmem:[%s1856_s1 + $0x38] sm:$0xff]  ;;  %v318_v2 = vld [vmem:[%s1858_s3] sm:$0xff]  ;;  %s1090_s4 = sshll.u32 %s1862_s7, 4  ;;  %s1091_s4 = int_to_ptr.hbm [resolvable:$true] %s1090_s4 }
  0x10   :  { %1344 = vset.pattern.permute.xlu0 %v1521_v0  ;;  %1345 = vset.pattern.permute.xlu1 %v1521_v0  ;;  %v1238_v3 = vld [vmem:[%s1856_s1 + $0x30] sm:$0xff]  ;;  %v1237_v5 = vld [vmem:[%s1856_s1 + $0x28] sm:$0xff]  ;;  %v321_v7 = vld [vmem:[%s1858_s3 + $0x18] sm:$0xff] }
  0x11   :  { %1346 = vset.pattern.permute.xlu2 %v1521_v0  ;;  %336 = vperm.xlu0 %1344, %v318_v2   ;;  %v320_v4 = vld [vmem:[%s1858_s3 + $0x10] sm:$0xff]  ;;  %v319_v6 = vld [vmem:[%s1858_s3 + $0x8] sm:$0xff]  ;;  %v1236_v8 = vld [vmem:[%s1856_s1 + $0x20] sm:$0xff] }
  0x12   :  { %218 = vmatpush.bf16.msra.mxu0 %v1239_v1  ;;  %1311 = vmatpush.bf16.msra.mxu3 %v1239_v1  ;;  %v1235_v9 = vld [vmem:[%s1856_s1 + $0x18] sm:$0xff]  ;;  %v324_v10 = vld [vmem:[%s1858_s3 + $0x30] sm:$0xff]  ;;  %v322_v12 = vld [vmem:[%s1858_s3 + $0x20] sm:$0xff] }
  0x13   :  { %346 = vperm.xlu1 %1345, %v320_v4   ;;  %v325_v11 = vld [vmem:[%s1858_s3 + $0x38] sm:$0xff]  ;;  %v1234_v13 = vld [vmem:[%s1856_s1 + $0x10] sm:$0xff]  ;;  %v110_v14 = vld [vmem:[#allocation3] sm:$0xff]  ;;  %356 = vperm.xlu2 %1346, %v322_v12  }
  0x14   :  { %v113_v15 = vld [vmem:[#allocation3 + $0x18] sm:$0xff]  ;;  %v114_v16 = vunpack.c.0.s8 %v110_v14  ;;  %v115_v17 = vunpack.c.1.s8 %v110_v14  ;;  %v1233_v20 = vld [vmem:[%s1856_s1 + $0x8] sm:$0xff]  ;;  %v330_v26 = vld [vmem:[%s1858_s3 + $0x60] sm:$0xff]  ;;  %v116_v33 = vunpack.c.2.s8 %v110_v14  ;;  %v117_v34 = vunpack.c.3.s8 %v110_v14 }
  0x15   :  { %v126_v18 = vunpack.c.0.s8 %v113_v15  ;;  %v127_v19 = vunpack.c.1.s8 %v113_v15  ;;  %v327_v21 = vld [vmem:[%s1858_s3 + $0x48] sm:$0xff]  ;;  %v1232_v27 = vld [vmem:[%s1856_s1] sm:$0xff]  ;;  %v328_v30 = vld [vmem:[%s1858_s3 + $0x50] sm:$0xff]  ;;  %v128_v35 = vunpack.c.2.s8 %v113_v15  ;;  %v129_v36 = vunpack.c.3.s8 %v113_v15 }
  0x16   :  { %219 = vmatpush.bf16.msra.mxu0 %v1238_v3  ;;  %1312 = vmatpush.bf16.msra.mxu3 %v1238_v3  ;;  %v130_v22 = vcvt.s32.f32 %v114_v16  ;;  %v131_v23 = vcvt.s32.f32 %v115_v17  ;;  %v329_v31 = vld [vmem:[%s1858_s3 + $0x58] sm:$0xff]  ;;  %v323_v32 = vld [vmem:[%s1858_s3 + $0x28] sm:$0xff]  ;;  %v326_v38 = vld [vmem:[%s1858_s3 + $0x40] sm:$0xff]  ;;  %v132_v39 = vcvt.s32.f32 %v116_v33  ;;  %v133_v40 = vcvt.s32.f32 %v117_v34 }
  0x17   :  { %v142_v24 = vcvt.s32.f32 %v126_v18  ;;  %v143_v25 = vcvt.s32.f32 %v127_v19  ;;  %v333_v37 = vld [vmem:[%s1858_s3 + $0x78] sm:$0xff]  ;;  %v144_v41 = vcvt.s32.f32 %v128_v35  ;;  %v145_v42 = vcvt.s32.f32 %v129_v36  ;;  %v331_v45 = vld [vmem:[%s1858_s3 + $0x68] sm:$0xff]  ;;  %v332_v52 = vld [vmem:[%s1858_s3 + $0x70] sm:$0xff] }
  0x18   :  { %v146_v28 = vpack.c.bf16 %v131_v23, %v130_v22  ;;  %v147_v43 = vpack.c.bf16 %v133_v40, %v132_v39  ;;  %v111_v46 = vld [vmem:[#allocation3 + $0x8] sm:$0xff]  ;;  %v1263_v58 = vld [vmem:[#allocation8 + $0x38] sm:$0xff]  ;;  %v112_v59 = vld [vmem:[#allocation3 + $0x10] sm:$0xff] }
  0x19   :  { %341 = vperm.xlu0 %1344, %v319_v6   ;;  %v152_v29 = vpack.c.bf16 %v143_v25, %v142_v24  ;;  %v153_v44 = vpack.c.bf16 %v145_v42, %v144_v41  ;;  %v118_v47 = vunpack.c.0.s8 %v111_v46  ;;  %v119_v48 = vunpack.c.1.s8 %v111_v46  ;;  %582 = vmatpush.bf16.msra.mxu1 %v1263_v58  ;;  %v1262_v60 = vld [vmem:[#allocation8 + $0x30] sm:$0xff]  ;;  %v1261_v63 = vld [vmem:[#allocation8 + $0x28] sm:$0xff]  ;;  %v1260_v2 = vld [vmem:[#allocation8 + $0x20] sm:$0xff] }
  0x1a   :  { %220 = vmatpush.bf16.msra.mxu0 %v1237_v5  ;;  %1313 = vmatpush.bf16.msra.mxu3 %v1237_v5  ;;  %v120_v53 = vunpack.c.2.s8 %v111_v46  ;;  %v121_v54 = vunpack.c.3.s8 %v111_v46  ;;  %v122_v61 = vunpack.c.0.s8 %v112_v59  ;;  %v123_v62 = vunpack.c.1.s8 %v112_v59  ;;  %v1259_v4 = vld [vmem:[#allocation8 + $0x18] sm:$0xff]  ;;  %v1258_v5 = vld [vmem:[#allocation8 + $0x10] sm:$0xff]  ;;  %v1256_v12 = vld [vmem:[#allocation8] sm:$0xff] }
  0x1b   :  { %351 = vperm.xlu1 %1345, %v321_v7   ;;  %361 = vperm.xlu2 %1346, %v323_v32   ;;  %v134_v49 = vcvt.s32.f32 %v118_v47  ;;  %v135_v50 = vcvt.s32.f32 %v119_v48  ;;  %v1247_v6 = vld [vmem:[#allocation6 + $0x38] sm:$0xff]  ;;  %v124_v7 = vunpack.c.2.s8 %v112_v59  ;;  %v1254_v15 = vld [vmem:[%s1857_s2 + $0x30] sm:$0xff]  ;;  %v1245_v16 = vld [vmem:[#allocation6 + $0x28] sm:$0xff] }
  0x1c   :  { %v136_v55 = vcvt.s32.f32 %v120_v53  ;;  %v137_v56 = vcvt.s32.f32 %v121_v54  ;;  %v138_v0 = vcvt.s32.f32 %v122_v61  ;;  %v139_v1 = vcvt.s32.f32 %v123_v62  ;;  %679 = vmatpush.bf16.msra.mxu2 %v1247_v6  ;;  %v1244_v17 = vld [vmem:[#allocation6 + $0x20] sm:$0xff]  ;;  %v1243_v18 = vld [vmem:[#allocation6 + $0x18] sm:$0xff]  ;;  %v1242_v19 = vld [vmem:[#allocation6 + $0x10] sm:$0xff] }
  0x1d   :  { %v148_v51 = vpack.c.bf16 %v135_v50, %v134_v49  ;;  %583 = vmatpush.bf16.msra.mxu1 %v1262_v60  ;;  %v1240_v22 = vld [vmem:[#allocation6] sm:$0xff]  ;;  %v1250_v39 = vld [vmem:[%s1857_s2 + $0x10] sm:$0xff]  ;;  %v1251_v54 = vld [vmem:[%s1857_s2 + $0x18] sm:$0xff] }
  0x1e   :  { %221 = vmatpush.bf16.msra.mxu0 %v1236_v8  ;;  %1314 = vmatpush.bf16.msra.mxu3 %v1236_v8  ;;  %v149_v57 = vpack.c.bf16 %v137_v56, %v136_v55  ;;  %v150_v3 = vpack.c.bf16 %v139_v1, %v138_v0  ;;  %v125_v8 = vunpack.c.3.s8 %v112_v59  ;;  %v1248_v23 = vld [vmem:[%s1857_s2] sm:$0xff] }
  0x21   :  { %366 = vperm.xlu0 %1344, %v324_v10   ;;  %584 = vmatpush.bf16.msra.mxu1 %v1261_v63  ;;  %v140_v10 = vcvt.s32.f32 %v124_v7 }
  0x22   :  { %222 = vmatpush.bf16.msra.mxu0 %v1235_v9  ;;  %1315 = vmatpush.bf16.msra.mxu3 %v1235_v9  ;;  %v1257_v9 = vld [vmem:[#allocation8 + $0x8] sm:$0xff] }
  0x23   :  { %371 = vperm.xlu1 %1345, %v325_v11   ;;  %376 = vperm.xlu2 %1346, %v326_v38   ;;  %v141_v11 = vcvt.s32.f32 %v125_v8  ;;  %v1253_v8 = vld [vmem:[%s1857_s2 + $0x28] sm:$0xff] }
  0x25   :  { %585 = vmatpush.bf16.msra.mxu1 %v1260_v2  ;;  %v151_v14 = vpack.c.bf16 %v141_v11, %v140_v10 }
  0x26   :  { %223 = vmatpush.bf16.msra.mxu0 %v1234_v13  ;;  %1316 = vmatpush.bf16.msra.mxu3 %v1234_v13  ;;  %v1246_v13 = vld [vmem:[#allocation6 + $0x30] sm:$0xff] }
  0x27   :  { %680 = vmatpush.bf16.msra.mxu2 %v1246_v13 }
  0x29   :  { %381 = vperm.xlu0 %1344, %v327_v21   ;;  %586 = vmatpush.bf16.msra.mxu1 %v1259_v4  ;;  %v1241_v21 = vld [vmem:[#allocation6 + $0x8] sm:$0xff] }
  0x2a   :  { %224 = vmatpush.bf16.msra.mxu0 %v1233_v20  ;;  %1317 = vmatpush.bf16.msra.mxu3 %v1233_v20  ;;  %v1255_v20 = vld [vmem:[%s1857_s2 + $0x38] sm:$0xff] }
  0x2b   :  { %396 = vperm.xlu1 %1345, %v330_v26   ;;  %401 = vperm.xlu2 %1346, %v331_v45  }
  0x2c   :  { %681 = vmatpush.bf16.msra.mxu2 %v1245_v16 }
  0x2d   :  { %587 = vmatpush.bf16.msra.mxu1 %v1258_v5 }
  0x2e   :  { %225 = vmatpush.bf16.msra.mxu0 %v1232_v27  ;;  %1318 = vmatpush.bf16.msra.mxu3 %v1232_v27 }
  0x30   :  { %682 = vmatpush.bf16.msra.mxu2 %v1244_v17 }
  0x31   :  { %226 = vmatmul.bf16.vlgmr.msra.gmra.mxu0 %v146_v28  ;;  %256 = vmatmul.bf16.vlgmr.msra.gmra.mxu3 %v152_v29 }
  0x32   :  { %386 = vperm.xlu0 %1344, %v328_v30   ;;  %1319 = vmatpush.bf16.msrb.mxu3 %v1263_v58  ;;  %v1249_v30 = vld [vmem:[%s1857_s2 + $0x8] sm:$0xff] }
  0x33   :  { %391 = vperm.xlu1 %1345, %v329_v31   ;;  %406 = vperm.xlu2 %1346, %v332_v52  }
  0x34   :  { %588 = vmatpush.bf16.msra.mxu1 %v1257_v9  ;;  %683 = vmatpush.bf16.msra.mxu2 %v1243_v18 }
  0x36   :  { %1320 = vmatpush.bf16.msrb.mxu3 %v1262_v60 }
  0x38   :  { %589 = vmatpush.bf16.msra.mxu1 %v1256_v12  ;;  %684 = vmatpush.bf16.msra.mxu2 %v1242_v19 }
  0x3a   :  { %411 = vperm.xlu0 %1344, %v333_v37   ;;  %1321 = vmatpush.bf16.msrb.mxu3 %v1261_v63 }
  0x3b   :  { %590 = vmatmul.bf16.vlgmr.msra.gmra.mxu1 %v1248_v23 }
  0x3c   :  { %685 = vmatpush.bf16.msra.mxu2 %v1241_v21 }
  0x3e   :  { %1322 = vmatpush.bf16.msrb.mxu3 %v1260_v2  ;;  %v1252_v2 = vld [vmem:[%s1857_s2 + $0x20] sm:$0xff] }
  0x40   :  { %686 = vmatpush.bf16.msra.mxu2 %v1240_v22 }
  0x41   :  { %231 = vmatmul.bf16.gmra.mxu0 %v147_v43  ;;  %261 = vmatmul.bf16.gmra.mxu3 %v153_v44 }
  0x42   :  { %1323 = vmatpush.bf16.msrb.mxu3 %v1259_v4 }
  0x46   :  { %1324 = vmatpush.bf16.msrb.mxu3 %v1258_v5 }
  0x4a   :  { %1325 = vmatpush.bf16.msrb.mxu3 %v1257_v9 }
  0x4b   :  { %595 = vmatmul.bf16.gmra.mxu1 %v1249_v30 }
  0x4e   :  { %1326 = vmatpush.bf16.msrb.mxu3 %v1256_v12 }
  0x51   :  { %236 = vmatmul.bf16.gmra.mxu0 %v148_v51  ;;  %620 = vmatmul.bf16.vlgmr.msrb.gmra.mxu3 %v1254_v15 }
  0x52   :  { %1327 = vmatpush.bf16.msra.mxu3 %v1247_v6 }
  0x56   :  { %1328 = vmatpush.bf16.msra.mxu3 %v1246_v13 }
  0x5a   :  { %1329 = vmatpush.bf16.msra.mxu3 %v1245_v16 }
  0x5b   :  { %600 = vmatmul.bf16.gmra.mxu1 %v1250_v39 }
  0x5e   :  { %1330 = vmatpush.bf16.msra.mxu3 %v1244_v17 }
  0x61   :  { %241 = vmatmul.bf16.gmra.mxu0 %v149_v57  ;;  %625 = vmatmul.bf16.gmra.mxu3 %v1255_v20 }
  0x62   :  { %1331 = vmatpush.bf16.msra.mxu3 %v1243_v18 }
  0x66   :  { %1332 = vmatpush.bf16.msra.mxu3 %v1242_v19 }
  0x6a   :  { %1333 = vmatpush.bf16.msra.mxu3 %v1241_v21 }
  0x6b   :  { %605 = vmatmul.bf16.gmra.mxu1 %v1251_v54 }
  0x6d   :  { %v357_v26 = vpop.permute.xlu2 %356 }
  0x6e   :  { %1334 = vmatpush.bf16.msra.mxu3 %v1240_v22 }
  0x71   :  { %246 = vmatmul.bf16.gmra.mxu0 %v150_v3 }
  0x75   :  { %v362_v29 = vpop.permute.xlu2 %361 }
  0x7b   :  { %610 = vmatmul.bf16.gmra.mxu1 %v1252_v2 }
  0x7d   :  { %v377_v34 = vpop.permute.xlu2 %376 }
  0x81   :  { %251 = vmatmul.bf16.gmra.mxu0 %v151_v14 }
  0x83   :  { %v337_v24 = vpop.permute.xlu0 %336 }
  0x85   :  { %v347_v25 = vpop.permute.xlu1 %346  ;;  %v402_v43 = vpop.permute.xlu2 %401 }
  0x8b   :  { %v342_v27 = vpop.permute.xlu0 %341  ;;  %615 = vmatmul.bf16.gmra.mxu1 %v1253_v8 }
  0x8d   :  { %v352_v28 = vpop.permute.xlu1 %351  ;;  %v407_v55 = vpop.permute.xlu2 %406 }
  0x93   :  { %v367_v31 = vpop.permute.xlu0 %366 }
  0x95   :  { %v372_v33 = vpop.permute.xlu1 %371 }
  0x9b   :  { %v382_v40 = vpop.permute.xlu0 %381 }
  0x9d   :  { %v397_v42 = vpop.permute.xlu1 %396 }
  0xa4   :  { %v387_v49 = vpop.permute.xlu0 %386 }
  0xa5   :  { %v392_v16 = vpop.permute.xlu1 %391 }
  0xac   :  { %v412_v58 = vpop.permute.xlu0 %411 }
  0xae   :  { %v227_v32 = vpop.f32.mrf.mxu0 }
  0xaf   :  { %v414_v37 = vmul.f32 %v337_v24, %v227_v32 }
  0xb4   :  { %v257_v35 = vpop.f32.mrf.mxu3 }
  0xb5   :  { %v426_v44 = vmul.f32 %v397_v42, %v257_v35 }
  0xb6   :  { %v229_v36 = vpop.f32.mrf.mxu0 }
  0xb7   :  { %v415_v38 = vmul.f32 %v342_v27, %v229_v36 }
  0xb8   :  { %v591_v23 = vpop.f32.mrf.mxu1 }
  0xb9   :  { %v430_v41 = vpack.c.bf16 %v415_v38, %v414_v37 }
  0xbb   :  { %687 = vmatmul.bf16.vlgmr.msra.gmra.mxu2 %v430_v41 }
  0xbc   :  { %v259_v45 = vpop.f32.mrf.mxu3 }
  0xbd   :  { %v427_v46 = vmul.f32 %v402_v43, %v259_v45 }
  0xbe   :  { %v232_v47 = vpop.f32.mrf.mxu0 }
  0xbf   :  { %v436_v48 = vpack.c.bf16 %v427_v46, %v426_v44  ;;  %v416_v52 = vmul.f32 %v347_v25, %v232_v47 }
  0xc0   :  { %v593_v25 = vpop.f32.mrf.mxu1 }
  0xc1   :  { %717 = vmatmul.bf16.vlgmr.msra.gmra.mxu3 %v436_v48 }
  0xc4   :  { %v262_v50 = vpop.f32.mrf.mxu3 }
  0xc5   :  { %v428_v57 = vmul.f32 %v407_v55, %v262_v50 }
  0xc6   :  { %v234_v51 = vpop.f32.mrf.mxu0 }
  0xc7   :  { %v417_v53 = vmul.f32 %v352_v28, %v234_v51  ;;  %v1683_v28 = vld [vmem:[%s1861_s6] ss:$0 sm:$0xff]  ;;  %s1522_s6 = smov [#allocation9]  }
  0xc8   :  { %v596_v27 = vpop.f32.mrf.mxu1  ;;  %s1088_s11 = sshll.u32 %s1522_s6, 4  ;;  %s1089_s11 = int_to_ptr.vmem [resolvable:$true] %s1088_s11 }
  0xc9   :  { %v431_v56 = vpack.c.bf16 %v417_v53, %v416_v52 }
  0xcb   :  { %692 = vmatmul.bf16.gmra.mxu2 %v431_v56 }
  0xcc   :  { %v264_v59 = vpop.f32.mrf.mxu3 }
  0xcd   :  { %v429_v60 = vmul.f32 %v412_v58, %v264_v59 }
  0xce   :  { %v237_v61 = vpop.f32.mrf.mxu0 }
  0xcf   :  { %v437_v62 = vpack.c.bf16 %v429_v60, %v428_v57  ;;  %v418_v0 = vmul.f32 %v357_v26, %v237_v61 }
  0xd0   :  { %v598_v37 = vpop.f32.mrf.mxu1 }
  0xd1   :  { %722 = vmatmul.bf16.gmra.mxu3 %v437_v62 }
  0xd4   :  { %v621_v21 = vpop.f32.mrf.mxu3 }
  0xd6   :  { %v239_v63 = vpop.f32.mrf.mxu0 }
  0xd7   :  { %v419_v1 = vmul.f32 %v362_v29, %v239_v63 }
  0xd8   :  { %v601_v47 = vpop.f32.mrf.mxu1 }
  0xd9   :  { %v432_v3 = vpack.c.bf16 %v419_v1, %v418_v0 }
  0xdb   :  { %697 = vmatmul.bf16.gmra.mxu2 %v432_v3 }
  0xdc   :  { %v1674_v22 = vpop.f32.mrf.mxu3 }
  0xde   :  { %v242_v4 = vpop.f32.mrf.mxu0 }
  0xdf   :  { %v420_v6 = vmul.f32 %v367_v31, %v242_v4 }
  0xe0   :  { %v603_v54 = vpop.f32.mrf.mxu1 }
  0xe4   :  { %v1676_v24 = vpop.f32.mrf.mxu3 }
  0xe6   :  { %v244_v5 = vpop.f32.mrf.mxu0 }
  0xe7   :  { %v421_v7 = vmul.f32 %v372_v33, %v244_v5 }
  0xe8   :  { %v606_v61 = vpop.f32.mrf.mxu1 }
  0xe9   :  { %v433_v9 = vpack.c.bf16 %v421_v7, %v420_v6 }
  0xeb   :  { %702 = vmatmul.bf16.gmra.mxu2 %v433_v9 }
  0xec   :  { %v1678_v26 = vpop.f32.mrf.mxu3 }
  0xee   :  { %v247_v10 = vpop.f32.mrf.mxu0 }
  0xef   :  { %v422_v12 = vmul.f32 %v377_v34, %v247_v10 }
  0xf0   :  { %v608_v4 = vpop.f32.mrf.mxu1 }
  0xf6   :  { %v249_v11 = vpop.f32.mrf.mxu0 }
  0xf7   :  { %v423_v13 = vmul.f32 %v382_v40, %v249_v11 }
  0xf9   :  { %v434_v14 = vpack.c.bf16 %v423_v13, %v422_v12  ;;  %v611_v13 = vpop.f32.mrf.mxu1 }
  0xfb   :  { %707 = vmatmul.bf16.gmra.mxu2 %v434_v14 }
  0xfe   :  { %v252_v15 = vpop.f32.mrf.mxu0 }
  0xff   :  { %v424_v18 = vmul.f32 %v387_v49, %v252_v15 }
 0x106   :  { %v254_v17 = vpop.f32.mrf.mxu0 }
 0x107   :  { %v425_v19 = vmul.f32 %v392_v16, %v254_v17 }
 0x109   :  { %v435_v20 = vpack.c.bf16 %v425_v19, %v424_v18 }
 0x10b   :  { %712 = vmatmul.bf16.gmra.mxu2 %v435_v20 }
 0x13e   :  { %v688_v29 = vpop.f32.mrf.mxu2 }
 0x13f   :  { %v689_v30 = vadd.f32 %v688_v29, %v591_v23 }
 0x141   :  { %v732_v31 = vadd.f32 %v1683_v28, %v689_v30 }
 0x143   :  { %v1686_v32 = vmax.f32 %v732_v31, 0.0 }
 0x144   :  { %v718_v33 = vpop.f32.mrf.mxu3 }
 0x145   :  { %v719_v34 = vadd.f32 %v718_v33, %v621_v21  ;;  %v764_v35 = vmul.f32 %v1686_v32, %v1686_v32  ;;  %v613_v21 = vpop.f32.mrf.mxu1 }
 0x146   :  { %v690_v36 = vpop.f32.mrf.mxu2 }
 0x147   :  { %v744_v38 = vadd.f32 %v1683_v28, %v719_v34  ;;  %v691_v39 = vadd.f32 %v690_v36, %v593_v25  ;;  %780 = vadd.xlane.f32.xlu1 %v764_v35 }
 0x149   :  { %v1691_v40 = vmax.f32 %v744_v38, 0.0  ;;  %v733_v41 = vadd.f32 %v1683_v28, %v691_v39 }
 0x14b   :  { %v1694_v42 = vmax.f32 %v733_v41, 0.0  ;;  %v776_v43 = vmul.f32 %v1691_v40, %v1691_v40 }
 0x14c   :  { %v720_v8 = vpop.f32.mrf.mxu3 }
 0x14d   :  { %804 = vadd.xlane.f32.xlu0 %v776_v43  ;;  %v765_v44 = vmul.f32 %v1694_v42, %v1694_v42  ;;  %v616_v35 = vpop.f32.mrf.mxu1  ;;  %v721_v41 = vadd.f32 %v720_v8, %v1674_v22 }
 0x14e   :  { %v693_v45 = vpop.f32.mrf.mxu2 }
 0x14f   :  { %v694_v46 = vadd.f32 %v693_v45, %v596_v27  ;;  %782 = vadd.xlane.f32.xlu2 %v765_v44  ;;  %v745_v45 = vadd.f32 %v1683_v28, %v721_v41 }
 0x151   :  { %v734_v48 = vadd.f32 %v1683_v28, %v694_v46  ;;  %v1753_v22 = vmax.f32 %v745_v45, 0.0 }
 0x153   :  { %v1701_v49 = vmax.f32 %v734_v48, 0.0 }
 0x154   :  { %v723_v16 = vpop.f32.mrf.mxu3 }
 0x155   :  { %v766_v50 = vmul.f32 %v1701_v49, %v1701_v49  ;;  %v618_v48 = vpop.f32.mrf.mxu1 }
 0x156   :  { %v695_v51 = vpop.f32.mrf.mxu2 }
 0x157   :  { %v696_v52 = vadd.f32 %v695_v51, %v598_v37  ;;  %784 = vadd.xlane.f32.xlu0 %v766_v50 }
 0x159   :  { %v735_v53 = vadd.f32 %v1683_v28, %v696_v52  ;;  %v724_v52 = vadd.f32 %v723_v16, %v1676_v24 }
 0x15b   :  { %v1706_v55 = vmax.f32 %v735_v53, 0.0 }
 0x15c   :  { %v725_v27 = vpop.f32.mrf.mxu3 }
 0x15d   :  { %v767_v56 = vmul.f32 %v1706_v55, %v1706_v55  ;;  %v726_v31 = vadd.f32 %v725_v27, %v1678_v26 }
 0x15e   :  { %v698_v57 = vpop.f32.mrf.mxu2 }
 0x15f   :  { %v699_v58 = vadd.f32 %v698_v57, %v601_v47  ;;  %786 = vadd.xlane.f32.xlu2 %v767_v56  ;;  %v747_v36 = vadd.f32 %v1683_v28, %v726_v31  ;;  %v746_v56 = vadd.f32 %v1683_v28, %v724_v52 }
 0x161   :  { %v736_v59 = vadd.f32 %v1683_v28, %v699_v58  ;;  %v1743_v43 = vmax.f32 %v747_v36, 0.0  ;;  %v777_v58 = vmul.f32 %v1753_v22, %v1753_v22 }
 0x163   :  { %v1711_v60 = vmax.f32 %v736_v59, 0.0  ;;  %v779_v46 = vmul.f32 %v1743_v43, %v1743_v43  ;;  %v1764_v59 = vmax.f32 %v746_v56, 0.0 }
 0x165   :  { %v768_v62 = vmul.f32 %v1711_v60, %v1711_v60 }
 0x166   :  { %v700_v63 = vpop.f32.mrf.mxu2 }
 0x167   :  { %v701_v0 = vadd.f32 %v700_v63, %v603_v54  ;;  %788 = vadd.xlane.f32.xlu1 %v768_v62 }
 0x169   :  { %v737_v1 = vadd.f32 %v1683_v28, %v701_v0 }
 0x16b   :  { %v1716_v2 = vmax.f32 %v737_v1, 0.0 }
 0x16d   :  { %v769_v3 = vmul.f32 %v1716_v2, %v1716_v2 }
 0x16e   :  { %v703_v5 = vpop.f32.mrf.mxu2 }
 0x16f   :  { %v704_v6 = vadd.f32 %v703_v5, %v606_v61  ;;  %790 = vadd.xlane.f32.xlu2 %v769_v3  ;;  %v778_v61 = vmul.f32 %v1764_v59, %v1764_v59 }
 0x171   :  { %v738_v7 = vadd.f32 %v1683_v28, %v704_v6 }
 0x173   :  { %v1721_v9 = vmax.f32 %v738_v7, 0.0 }
 0x175   :  { %v770_v10 = vmul.f32 %v1721_v9, %v1721_v9 }
 0x176   :  { %v705_v11 = vpop.f32.mrf.mxu2 }
 0x177   :  { %v706_v12 = vadd.f32 %v705_v11, %v608_v4  ;;  %792 = vadd.xlane.f32.xlu0 %v770_v10 }
 0x179   :  { %v739_v14 = vadd.f32 %v1683_v28, %v706_v12 }
 0x17b   :  { %v1726_v15 = vmax.f32 %v739_v14, 0.0 }
 0x17d   :  { %v771_v17 = vmul.f32 %v1726_v15, %v1726_v15 }
 0x17e   :  { %v708_v18 = vpop.f32.mrf.mxu2 }
 0x17f   :  { %v709_v19 = vadd.f32 %v708_v18, %v611_v13  ;;  %794 = vadd.xlane.f32.xlu1 %v771_v17 }
 0x181   :  { %v740_v20 = vadd.f32 %v1683_v28, %v709_v19 }
 0x183   :  { %v1731_v23 = vmax.f32 %v740_v20, 0.0 }
 0x185   :  { %v772_v25 = vmul.f32 %v1731_v23, %v1731_v23 }
 0x186   :  { %v710_v29 = vpop.f32.mrf.mxu2 }
 0x187   :  { %v711_v30 = vadd.f32 %v710_v29, %v613_v21  ;;  %796 = vadd.xlane.f32.xlu2 %v772_v25 }
 0x189   :  { %v741_v33 = vadd.f32 %v1683_v28, %v711_v30 }
 0x18b   :  { %v1737_v34 = vmax.f32 %v741_v33, 0.0 }
 0x18d   :  { %v773_v37 = vmul.f32 %v1737_v34, %v1737_v34 }
 0x18e   :  { %v713_v38 = vpop.f32.mrf.mxu2 }
 0x18f   :  { %v714_v39 = vadd.f32 %v713_v38, %v616_v35  ;;  %798 = vadd.xlane.f32.xlu0 %v773_v37 }
 0x191   :  { %v742_v44 = vadd.f32 %v1683_v28, %v714_v39 }
 0x193   :  { %v1746_v26 = vmax.f32 %v742_v44, 0.0 }
 0x195   :  { %v774_v47 = vmul.f32 %v1746_v26, %v1746_v26 }
 0x196   :  { %v715_v50 = vpop.f32.mrf.mxu2 }
 0x197   :  { %v716_v51 = vadd.f32 %v715_v50, %v618_v48  ;;  %810 = vadd.xlane.f32.xlu0 %v779_v46  ;;  %800 = vadd.xlane.f32.xlu1 %v774_v47 }
 0x199   :  { %v743_v53 = vadd.f32 %v1683_v28, %v716_v51 }
 0x19b   :  { %v1757_v54 = vmax.f32 %v743_v53, 0.0 }
 0x19d   :  { %v775_v57 = vmul.f32 %v1757_v54, %v1757_v54 }
 0x19f   :  { %802 = vadd.xlane.f32.xlu2 %v775_v57  ;;  %806 = vadd.xlane.f32.xlu1 %v777_v58 }
 0x1a7   :  { %808 = vadd.xlane.f32.xlu2 %v778_v61 }
 0x1ba   :  { %v781_v24 = vpop.xlane.xlu1 %780 }
 0x1bb   :  { %1348 = vrsqrt.f32 %v781_v24  ;;  %vm819_vm0 = vcmp.eq.f32.partialorder %v781_v24, inf  ;;  %v822_v14 = vand.u32 2147483648, %v781_v24  ;;  %vm821_vm1 = vcmp.eq.f32.partialorder %v781_v24, 0.0 }
 0x1c0   :  { %v1768_v0 = vpop.xlane.xlu0 %804 }
 0x1c1   :  { %v1349_v62 = vpop.eup %1348 }
 0x1c2   :  { %v813_v63 = vmul.f32 %v1349_v62, %v781_v24  ;;  %v783_v28 = vpop.xlane.xlu2 %782 }
 0x1c3   :  { %1350 = vrsqrt.f32 %v783_v28  ;;  %vm831_vm2 = vcmp.eq.f32.partialorder %v783_v28, inf  ;;  %v834_v30 = vand.u32 2147483648, %v783_v28  ;;  %vm833_vm3 = vcmp.eq.f32.partialorder %v783_v28, 0.0 }
 0x1c4   :  { %v814_v1 = vmul.f32 %v1349_v62, %v813_v63 }
 0x1c6   :  { %v815_v3 = vmul.f32 0.5, %v814_v1 }
 0x1c8   :  { %v816_v4 = vsub.f32 1.5, %v815_v3 }
 0x1c9   :  { %v1351_v5 = vpop.eup %1350 }
 0x1ca   :  { %v817_v6 = vmul.f32 %v1349_v62, %v816_v4  ;;  %v825_v7 = vmul.f32 %v1351_v5, %v783_v28  ;;  %v785_v8 = vpop.xlane.xlu0 %784 }
 0x1cb   :  { %1352 = vrsqrt.f32 %v785_v8  ;;  %vm843_vm4 = vcmp.eq.f32.partialorder %v785_v8, inf  ;;  %v846_v51 = vand.u32 2147483648, %v785_v8  ;;  %vm845_vm5 = vcmp.eq.f32.partialorder %v785_v8, 0.0 }
 0x1cc   :  { %v818_v10 = vmul.f32 %v817_v6, %v781_v24  ;;  %v826_v11 = vmul.f32 %v1351_v5, %v825_v7 }
 0x1ce   :  { %v820_v12 = vsel %vm819_vm0, %v781_v24, %v818_v10  ;;  %v827_v13 = vmul.f32 0.5, %v826_v11 }
 0x1cf   :  { %v823_v18 = vsel %vm821_vm1, %v822_v14, %v820_v12 }
 0x1d0   :  { %v828_v16 = vsub.f32 1.5, %v827_v13  ;;  %v1004_v25 = vadd.f32 1e-08, %v823_v18 }
 0x1d1   :  { %v1353_v17 = vpop.eup %1352 }
 0x1d2   :  { %v829_v19 = vmul.f32 %v1351_v5, %v828_v16  ;;  %v837_v20 = vmul.f32 %v1353_v17, %v785_v8  ;;  %v787_v21 = vpop.xlane.xlu2 %786 }
 0x1d3   :  { %1354 = vrsqrt.f32 %v787_v21  ;;  %vm855_vm6 = vcmp.eq.f32.partialorder %v787_v21, inf  ;;  %v858_v5 = vand.u32 2147483648, %v787_v21  ;;  %vm857_vm7 = vcmp.eq.f32.partialorder %v787_v21, 0.0 }
 0x1d4   :  { %v830_v27 = vmul.f32 %v829_v19, %v783_v28  ;;  %v838_v29 = vmul.f32 %v1353_v17, %v837_v20  ;;  %1356 = vrcp.f32 %v1004_v25 }
 0x1d6   :  { %v832_v31 = vsel %vm831_vm2, %v783_v28, %v830_v27  ;;  %v839_v33 = vmul.f32 0.5, %v838_v29 }
 0x1d7   :  { %v835_v35 = vsel %vm833_vm3, %v834_v30, %v832_v31 }
 0x1d8   :  { %v1005_v36 = vadd.f32 1e-08, %v835_v35  ;;  %v840_v37 = vsub.f32 1.5, %v839_v33 }
 0x1d9   :  { %v1355_v38 = vpop.eup %1354 }
 0x1da   :  { %1358 = vrcp.f32 %v1005_v36  ;;  %v841_v39 = vmul.f32 %v1353_v17, %v840_v37  ;;  %v849_v41 = vmul.f32 %v1355_v38, %v787_v21  ;;  %v789_v44 = vpop.xlane.xlu1 %788  ;;  %v1357_v47 = vpop.eup %1356 }
 0x1db   :  { %1360 = vrsqrt.f32 %v789_v44  ;;  %v1036_v57 = vmul.f32 %v1357_v47, %v1686_v32  ;;  %vm867_vm8 = vcmp.eq.f32.partialorder %v789_v44, inf  ;;  %v870_v20 = vand.u32 2147483648, %v789_v44 }
 0x1dc   :  { %v842_v45 = vmul.f32 %v841_v39, %v785_v8  ;;  %v850_v46 = vmul.f32 %v1355_v38, %v849_v41  ;;  %vm869_vm9 = vcmp.eq.f32.partialorder %v789_v44, 0.0 }
 0x1de   :  { %v844_v48 = vsel %vm843_vm4, %v785_v8, %v842_v45  ;;  %v851_v50 = vmul.f32 0.5, %v850_v46  ;;  %vm963_vm4 = vcmp.eq.f32.partialorder %v1768_v0, inf }
 0x1df   :  { %v847_v61 = vsel %vm845_vm5, %v846_v51, %v844_v48 }
 0x1e0   :  { %v1359_v52 = vpop.eup %1358  ;;  %v852_v53 = vsub.f32 1.5, %v851_v50  ;;  %v1006_v1 = vadd.f32 1e-08, %v847_v61 }
 0x1e1   :  { %v1361_v56 = vpop.eup %1360  ;;  %v1037_v58 = vmul.f32 %v1359_v52, %v1694_v42 }
 0x1e2   :  { %v853_v24 = vmul.f32 %v1355_v38, %v852_v53  ;;  %v861_v62 = vmul.f32 %v1361_v56, %v789_v44  ;;  %v791_v63 = vpop.xlane.xlu2 %790 }
 0x1e3   :  { %v1267_v28 = vpack.c.bf16 %v1037_v58, %v1036_v57  ;;  %1362 = vrsqrt.f32 %v791_v63  ;;  %vm879_vm10 = vcmp.eq.f32.partialorder %v791_v63, inf  ;;  %v882_v45 = vand.u32 2147483648, %v791_v63 }
 0x1e4   :  { %v854_v3 = vmul.f32 %v853_v24, %v787_v21  ;;  %v862_v4 = vmul.f32 %v1361_v56, %v861_v62  ;;  %1364 = vrcp.f32 %v1006_v1  ;;  %vm881_vm11 = vcmp.eq.f32.partialorder %v791_v63, 0.0 }
 0x1e5   :  { %1268 = vst [vmem:[#allocation9] sm:$0xff] %v1267_v28  }
 0x1e6   :  { %v856_v6 = vsel %vm855_vm6, %v787_v21, %v854_v3  ;;  %v863_v7 = vmul.f32 0.5, %v862_v4  ;;  %vm965_vm6 = vcmp.eq.f32.partialorder %v1768_v0, 0.0 }
 0x1e7   :  { %v859_v8 = vsel %vm857_vm7, %v858_v5, %v856_v6 }
 0x1e8   :  { %v1007_v32 = vadd.f32 1e-08, %v859_v8  ;;  %v864_v10 = vsub.f32 1.5, %v863_v7 }
 0x1e9   :  { %v1363_v42 = vpop.eup %1362 }
 0x1ea   :  { %1366 = vrcp.f32 %v1007_v32  ;;  %v865_v11 = vmul.f32 %v1361_v56, %v864_v10  ;;  %v873_v12 = vmul.f32 %v1363_v42, %v791_v63  ;;  %v793_v13 = vpop.xlane.xlu0 %792  ;;  %v1365_v17 = vpop.eup %1364 }
 0x1eb   :  { %1368 = vrsqrt.f32 %v793_v13  ;;  %v1038_v29 = vmul.f32 %v1365_v17, %v1701_v49  ;;  %vm891_vm12 = vcmp.eq.f32.partialorder %v793_v13, inf  ;;  %v894_v62 = vand.u32 2147483648, %v793_v13 }
 0x1ec   :  { %v866_v14 = vmul.f32 %v865_v11, %v789_v44  ;;  %v874_v16 = vmul.f32 %v1363_v42, %v873_v12  ;;  %vm893_vm13 = vcmp.eq.f32.partialorder %v793_v13, 0.0 }
 0x1ee   :  { %v868_v18 = vsel %vm867_vm8, %v789_v44, %v866_v14  ;;  %v875_v19 = vmul.f32 0.5, %v874_v16 }
 0x1ef   :  { %v871_v31 = vsel %vm869_vm9, %v870_v20, %v868_v18 }
 0x1f0   :  { %v1367_v25 = vpop.eup %1366  ;;  %v876_v21 = vsub.f32 1.5, %v875_v19  ;;  %v1008_v38 = vadd.f32 1e-08, %v871_v31 }
 0x1f1   :  { %v1369_v27 = vpop.eup %1368  ;;  %v1039_v30 = vmul.f32 %v1367_v25, %v1706_v55 }
 0x1f2   :  { %v877_v33 = vmul.f32 %v1363_v42, %v876_v21  ;;  %v885_v35 = vmul.f32 %v1369_v27, %v793_v13  ;;  %v795_v36 = vpop.xlane.xlu1 %794 }
 0x1f3   :  { %v1272_v37 = vpack.c.bf16 %v1039_v30, %v1038_v29  ;;  %1370 = vrsqrt.f32 %v795_v36  ;;  %vm903_vm14 = vcmp.eq.f32.partialorder %v795_v36, inf  ;;  %vm905_vm15 = vcmp.eq.f32.partialorder %v795_v36, 0.0 }
 0x1f4   :  { %v878_v39 = vmul.f32 %v877_v33, %v791_v63  ;;  %v886_v41 = vmul.f32 %v1369_v27, %v885_v35  ;;  %1372 = vrcp.f32 %v1008_v38 }
 0x1f5   :  { %1304 = vst [vmem:[#allocation9 + $0x8] sm:$0xff] %v1272_v37   ;;  %1374 = vrsqrt.f32 %v1768_v0 }
 0x1f6   :  { %v880_v46 = vsel %vm879_vm10, %v791_v63, %v878_v39  ;;  %v887_v44 = vmul.f32 0.5, %v886_v41 }
 0x1f7   :  { %v883_v47 = vsel %vm881_vm11, %v882_v45, %v880_v46 }
 0x1f8   :  { %v1009_v49 = vadd.f32 1e-08, %v883_v47  ;;  %v888_v48 = vsub.f32 1.5, %v887_v44 }
 0x1f9   :  { %v1371_v55 = vpop.eup %1370 }
 0x1fa   :  { %1376 = vrcp.f32 %v1009_v49  ;;  %v889_v50 = vmul.f32 %v1369_v27, %v888_v48  ;;  %v897_v51 = vmul.f32 %v1371_v55, %v795_v36  ;;  %v797_v52 = vpop.xlane.xlu2 %796  ;;  %v1373_v57 = vpop.eup %1372 }
 0x1fb   :  { %1378 = vrsqrt.f32 %v797_v52  ;;  %v1375_v24 = vpop.eup %1374  ;;  %v1040_v3 = vmul.f32 %v1373_v57, %v1711_v60  ;;  %vm915_vm0 = vcmp.eq.f32.partialorder %v797_v52, inf  ;;  %v918_v37 = vand.u32 2147483648, %v797_v52 }
 0x1fc   :  { %v890_v53 = vmul.f32 %v889_v50, %v793_v13  ;;  %v898_v56 = vmul.f32 %v1371_v55, %v897_v51  ;;  %v957_v10 = vmul.f32 %v1375_v24, %v1768_v0  ;;  %vm917_vm1 = vcmp.eq.f32.partialorder %v797_v52, 0.0 }
 0x1fe   :  { %v892_v58 = vsel %vm891_vm12, %v793_v13, %v890_v53  ;;  %v899_v61 = vmul.f32 0.5, %v898_v56  ;;  %v906_v13 = vand.u32 2147483648, %v795_v36  ;;  %v958_v16 = vmul.f32 %v1375_v24, %v957_v10 }
 0x1ff   :  { %v895_v5 = vsel %vm893_vm13, %v894_v62, %v892_v58 }
 0x200   :  { %v1377_v63 = vpop.eup %1376  ;;  %v900_v28 = vsub.f32 1.5, %v899_v61  ;;  %v1010_v42 = vadd.f32 1e-08, %v895_v5  ;;  %v959_v29 = vmul.f32 0.5, %v958_v16 }
 0x201   :  { %v1379_v1 = vpop.eup %1378  ;;  %v1041_v4 = vmul.f32 %v1377_v63, %v1716_v2 }
 0x202   :  { %v901_v6 = vmul.f32 %v1371_v55, %v900_v28  ;;  %v909_v7 = vmul.f32 %v1379_v1, %v797_v52  ;;  %v1777_v8 = vpop.xlane.xlu0 %798  ;;  %v960_v39 = vsub.f32 1.5, %v959_v29 }
 0x203   :  { %v1277_v32 = vpack.c.bf16 %v1041_v4, %v1040_v3  ;;  %1380 = vrsqrt.f32 %v1777_v8  ;;  %vm927_vm2 = vcmp.eq.f32.partialorder %v1777_v8, inf  ;;  %vm929_vm3 = vcmp.eq.f32.partialorder %v1777_v8, 0.0 }
 0x204   :  { %v902_v11 = vmul.f32 %v901_v6, %v795_v36  ;;  %v910_v12 = vmul.f32 %v1379_v1, %v909_v7  ;;  %1382 = vrcp.f32 %v1010_v42 }
 0x205   :  { %1305 = vst [vmem:[#allocation9 + $0x10] sm:$0xff] %v1277_v32  }
 0x206   :  { %v904_v14 = vsel %vm903_vm14, %v795_v36, %v902_v11  ;;  %v911_v60 = vmul.f32 0.5, %v910_v12 }
 0x207   :  { %v907_v2 = vsel %vm905_vm15, %v906_v13, %v904_v14  ;;  %v966_v13 = vand.u32 2147483648, %v1768_v0 }
 0x208   :  { %v1011_v17 = vadd.f32 1e-08, %v907_v2  ;;  %v912_v18 = vsub.f32 1.5, %v911_v60 }
 0x209   :  { %v1381_v19 = vpop.eup %1380 }
 0x20a   :  { %1384 = vrcp.f32 %v1011_v17  ;;  %v913_v20 = vmul.f32 %v1379_v1, %v912_v18  ;;  %v921_v25 = vmul.f32 %v1381_v19, %v1777_v8  ;;  %v1782_v21 = vpop.xlane.xlu0 %810  ;;  %v1784_v27 = vpop.xlane.xlu1 %800 }
 0x20b   :  { %1386 = vrsqrt.f32 %v1782_v21  ;;  %v1383_v33 = vpop.eup %1382  ;;  %vm939_vm5 = vcmp.eq.f32.partialorder %v1784_v27, inf  ;;  %vm941_vm7 = vcmp.eq.f32.partialorder %v1784_v27, 0.0  ;;  %vm999_vm8 = vcmp.eq.f32.partialorder %v1782_v21, inf }
 0x20c   :  { %v914_v30 = vmul.f32 %v913_v20, %v797_v52  ;;  %v922_v31 = vmul.f32 %v1381_v19, %v921_v25  ;;  %1388 = vrsqrt.f32 %v1784_v27  ;;  %v1042_v46 = vmul.f32 %v1383_v33, %v1721_v9 }
 0x20d   :  { %vm1001_vm9 = vcmp.eq.f32.partialorder %v1782_v21, 0.0 }
 0x20e   :  { %v916_v35 = vsel %vm915_vm0, %v797_v52, %v914_v30  ;;  %v923_v36 = vmul.f32 0.5, %v922_v31  ;;  %v961_v52 = vmul.f32 %v1375_v24, %v960_v39 }
 0x20f   :  { %v919_v47 = vsel %vm917_vm1, %v918_v37, %v916_v35 }
 0x210   :  { %v1385_v38 = vpop.eup %1384  ;;  %v924_v41 = vsub.f32 1.5, %v923_v36  ;;  %v1012_v57 = vadd.f32 1e-08, %v919_v47  ;;  %v962_v4 = vmul.f32 %v961_v52, %v1768_v0 }
 0x211   :  { %v1387_v45 = vpop.eup %1386  ;;  %v1043_v44 = vmul.f32 %v1385_v38, %v1726_v15  ;;  %v930_v15 = vand.u32 2147483648, %v1777_v8 }
 0x212   :  { %v1389_v49 = vpop.eup %1388  ;;  %v925_v48 = vmul.f32 %v1381_v19, %v924_v41  ;;  %v993_v55 = vmul.f32 %v1387_v45, %v1782_v21  ;;  %v1791_v50 = vpop.xlane.xlu2 %802  ;;  %v964_v12 = vsel %vm963_vm4, %v1768_v0, %v962_v4  ;;  %v942_v19 = vand.u32 2147483648, %v1784_v27 }
 0x213   :  { %v1793_v51 = vpop.xlane.xlu1 %806  ;;  %v1282_v53 = vpack.c.bf16 %v1043_v44, %v1042_v46  ;;  %v933_v56 = vmul.f32 %v1389_v49, %v1784_v27  ;;  %1390 = vrsqrt.f32 %v1791_v50  ;;  %v967_v25 = vsel %vm965_vm6, %v966_v13, %v964_v12 }
 0x214   :  { %v926_v9 = vmul.f32 %v925_v48, %v1777_v8  ;;  %v994_v58 = vmul.f32 %v1387_v45, %v993_v55  ;;  %1392 = vrsqrt.f32 %v1793_v51  ;;  %v1016_v41 = vadd.f32 1e-08, %v967_v25 }
 0x215   :  { %1306 = vst [vmem:[#allocation9 + $0x18] sm:$0xff] %v1282_v53   ;;  %v934_v61 = vmul.f32 %v1389_v49, %v933_v56  ;;  %1394 = vrcp.f32 %v1012_v57  ;;  %vm951_vm10 = vcmp.eq.f32.partialorder %v1791_v50, inf  ;;  %vm953_vm11 = vcmp.eq.f32.partialorder %v1791_v50, 0.0 }
 0x216   :  { %v928_v62 = vsel %vm927_vm2, %v1777_v8, %v926_v9  ;;  %v995_v63 = vmul.f32 0.5, %v994_v58  ;;  %v954_v47 = vand.u32 2147483648, %v1791_v50  ;;  %vm975_vm12 = vcmp.eq.f32.partialorder %v1793_v51, inf }
 0x217   :  { %v931_v28 = vsel %vm929_vm3, %v930_v15, %v928_v62  ;;  %v935_v1 = vmul.f32 0.5, %v934_v61  ;;  %vm977_vm13 = vcmp.eq.f32.partialorder %v1793_v51, 0.0  ;;  %v978_v52 = vand.u32 2147483648, %v1793_v51 }
 0x218   :  { %v1013_v24 = vadd.f32 1e-08, %v931_v28  ;;  %v996_v6 = vsub.f32 1.5, %v995_v63 }
 0x219   :  { %v1391_v3 = vpop.eup %1390  ;;  %v936_v5 = vsub.f32 1.5, %v935_v1 }
 0x21a   :  { %1396 = vrcp.f32 %v1013_v24  ;;  %v945_v7 = vmul.f32 %v1391_v3, %v1791_v50  ;;  %v1805_v32 = vpop.xlane.xlu2 %808  ;;  %v1393_v10 = vpop.eup %1392  ;;  %v997_v2 = vmul.f32 %v1387_v45, %v996_v6 }
 0x21b   :  { %v937_v42 = vmul.f32 %v1389_v49, %v936_v5  ;;  %1398 = vrsqrt.f32 %v1805_v32  ;;  %v969_v11 = vmul.f32 %v1393_v10, %v1793_v51  ;;  %v1395_v60 = vpop.eup %1394  ;;  %vm987_vm14 = vcmp.eq.f32.partialorder %v1805_v32, inf }
 0x21c   :  { %v946_v8 = vmul.f32 %v1391_v3, %v945_v7  ;;  %v1044_v33 = vmul.f32 %v1395_v60, %v1731_v23  ;;  %v998_v37 = vmul.f32 %v997_v2, %v1782_v21  ;;  %v990_v1 = vand.u32 2147483648, %v1805_v32 }
 0x21d   :  { %v938_v14 = vmul.f32 %v937_v42, %v1784_v27  ;;  %v970_v17 = vmul.f32 %v1393_v10, %v969_v11  ;;  %vm989_vm15 = vcmp.eq.f32.partialorder %v1805_v32, 0.0 }
 0x21e   :  { %v947_v16 = vmul.f32 0.5, %v946_v8  ;;  %v1000_v49 = vsel %vm999_vm8, %v1782_v21, %v998_v37 }
 0x21f   :  { %v940_v18 = vsel %vm939_vm5, %v1784_v27, %v938_v14  ;;  %v971_v30 = vmul.f32 0.5, %v970_v17 }
 0x220   :  { %v1397_v20 = vpop.eup %1396  ;;  %v948_v29 = vsub.f32 1.5, %v947_v16  ;;  %v943_v36 = vsel %vm941_vm7, %v942_v19, %v940_v18 }
 0x221   :  { %v1399_v31 = vpop.eup %1398  ;;  %v1045_v35 = vmul.f32 %v1397_v20, %v1737_v34  ;;  %v972_v0 = vsub.f32 1.5, %v971_v30  ;;  %v1014_v27 = vadd.f32 1e-08, %v943_v36  ;;  %v1002_v34 = vand.u32 2147483648, %v1782_v21 }
 0x222   :  { %v949_v38 = vmul.f32 %v1391_v3, %v948_v29  ;;  %v981_v39 = vmul.f32 %v1399_v31, %v1805_v32 }
 0x223   :  { %v1287_v45 = vpack.c.bf16 %v1045_v35, %v1044_v33  ;;  %v973_v44 = vmul.f32 %v1393_v10, %v972_v0  ;;  %1400 = vrcp.f32 %v1014_v27  ;;  %v1003_v15 = vsel %vm1001_vm9, %v1002_v34, %v1000_v49 }
 0x224   :  { %v950_v46 = vmul.f32 %v949_v38, %v1791_v50  ;;  %v982_v23 = vmul.f32 %v1399_v31, %v981_v39  ;;  %1402 = vrcp.f32 %v1016_v41  ;;  %v1019_v63 = vadd.f32 1e-08, %v1003_v15 }
 0x225   :  { %1307 = vst [vmem:[#allocation9 + $0x20] sm:$0xff] %v1287_v45   ;;  %v974_v55 = vmul.f32 %v973_v44, %v1793_v51 }
 0x226   :  { %v952_v48 = vsel %vm951_vm10, %v1791_v50, %v950_v46  ;;  %v983_v53 = vmul.f32 0.5, %v982_v23 }
 0x227   :  { %v955_v56 = vsel %vm953_vm11, %v954_v47, %v952_v48  ;;  %v976_v9 = vsel %vm975_vm12, %v1793_v51, %v974_v55 }
 0x228   :  { %v1015_v57 = vadd.f32 1e-08, %v955_v56  ;;  %v984_v58 = vsub.f32 1.5, %v983_v53  ;;  %v979_v50 = vsel %vm977_vm13, %v978_v52, %v976_v9 }
 0x229   :  { %v1017_v61 = vadd.f32 1e-08, %v979_v50  ;;  %v1401_v24 = vpop.eup %1400 }
 0x22a   :  { %1404 = vrcp.f32 %v1015_v57  ;;  %v985_v62 = vmul.f32 %v1399_v31, %v984_v58  ;;  %v1403_v3 = vpop.eup %1402  ;;  %v1046_v6 = vmul.f32 %v1401_v24, %v1746_v26 }
 0x22b   :  { %1406 = vrcp.f32 %v1017_v61  ;;  %v1048_v42 = vmul.f32 %v1403_v3, %v1691_v40 }
 0x22c   :  { %v986_v28 = vmul.f32 %v985_v62, %v1805_v32  ;;  %1408 = vrcp.f32 %v1019_v63 }
 0x22e   :  { %v988_v51 = vsel %vm987_vm14, %v1805_v32, %v986_v28 }
 0x22f   :  { %v991_v21 = vsel %vm989_vm15, %v990_v1, %v988_v51 }
 0x230   :  { %v1405_v4 = vpop.eup %1404  ;;  %v1018_v5 = vadd.f32 1e-08, %v991_v21 }
 0x231   :  { %v1047_v7 = vmul.f32 %v1405_v4, %v1757_v54  ;;  %v1407_v10 = vpop.eup %1406 }
 0x232   :  { %1410 = vrcp.f32 %v1018_v5  ;;  %v1049_v11 = vmul.f32 %v1407_v10, %v1753_v22  ;;  %v1409_v13 = vpop.eup %1408 }
 0x233   :  { %v1292_v8 = vpack.c.bf16 %v1047_v7, %v1046_v6  ;;  %v1051_v26 = vmul.f32 %v1409_v13, %v1743_v43 }
 0x234   :  { %v1297_v12 = vpack.c.bf16 %v1049_v11, %v1048_v42 }
 0x235   :  { %1308 = vst [vmem:[#allocation9 + $0x28] sm:$0xff] %v1292_v8  }
 0x236   :  { %1309 = vst [vmem:[#allocation9 + $0x30] sm:$0xff] %v1297_v12  }
 0x238   :  { %v1411_v32 = vpop.eup %1410 }
 0x239   :  { %v1050_v54 = vmul.f32 %v1411_v32, %v1764_v59 }
 0x23b   :  { %v1302_v14 = vpack.c.bf16 %v1051_v26, %v1050_v54 }
 0x23d   :  { %1310 = vst [vmem:[#allocation9 + $0x38] sm:$0xff] %v1302_v14  }
 0x23e   :  { %1096 = dma.vmem_to_hbm [thread:$0]  %s1089_s11, 1024, %s1091_s4, [#allocation5], %s1515_s9, %s1515_s9, %s1516_s10  }
 0x23f   :  { %1512 = dma.done.wait [#allocation5], 1024  }
 0x240   :  { %1513 = vsyncadd [#allocation5], 4294966272 }
 0x241   :  { %1101 = vsyncpa [#allocation4], 1 }
 0x242   :  { %1102 = vsyncpa [#allocation7], 1 }
 0x243   :  { %1103 = vsyncpa [#allocation5], 1 }

</bundles_post_ra>
